<compile_context>
chip_gen: v7x
topology: tpu7x:2x2x1
jax: 0.10.0
libtpu: 0.0.40
codegen_flags: <defaults>
</compile_context>

<pallas_src>
import functools

import jax
import jax.numpy as jnp
from jax.experimental import pallas as pl
from jax.experimental.pallas import tpu as pltpu

EPS = 1e-5


def residual_kernel(x_ref, w_ref, b_ref, g_ref, beta_ref, o_ref):
    # x_ref:    (TM, D)  residual input tile (native dtype)
    # w_ref:    (D, D)   sublayer (Linear) weight, resident across the grid
    # b_ref:    (1, D)   sublayer bias
    # g_ref:    (1, D)   LayerNorm gamma
    # beta_ref: (1, D)   LayerNorm beta
    x = x_ref[...]

    # sublayer(x) = x @ W + b  — MXU in native dtype, f32 accumulation.
    y = jnp.dot(x, w_ref[...], preferred_element_type=jnp.float32)
    y = y + b_ref[...].astype(jnp.float32)

    # dropout (eval mode -> identity), then residual add in f32.
    z = x.astype(jnp.float32) + y

    # LayerNorm over the last dim (biased variance, eps inside rsqrt).
    inv_d = jnp.float32(1.0 / z.shape[-1])
    mean = jnp.sum(z, axis=-1, keepdims=True) * inv_d
    cz = z - mean
    var = jnp.sum(cz * cz, axis=-1, keepdims=True) * inv_d
    norm = cz * jax.lax.rsqrt(var + EPS)
    out = norm * g_ref[...].astype(jnp.float32) + beta_ref[...].astype(jnp.float32)

    o_ref[...] = out.astype(o_ref.dtype)


def residual_forward(x, w, b, gamma, beta, *, tile_m=256):
    """x: [B, S, D]; w: [D, D]; b, gamma, beta: [D]. Returns [B, S, D].

    tile_m: rows per grid step. Use a multiple of 256 on v6e/v7x, 128 on v5e.
    """
    B, S, D = x.shape
    M = B * S

    grid_m = pl.cdiv(M, tile_m)
    m_pad = grid_m * tile_m

    x2 = x.reshape(M, D)
    if m_pad != M:
        # Pad rows to the tile boundary; padded rows are computed and discarded
        # (costs < 1 tile of extra bandwidth, keeps tile_m large).
        x2 = jnp.pad(x2, ((0, m_pad - M), (0, 0)))

    b2 = b.reshape(1, D)
    g2 = gamma.reshape(1, D)
    beta2 = beta.reshape(1, D)

    # Explicit VMEM budget: double-buffered W + double-buffered in/out row tiles
    # + small params + headroom.  Clamped to 64 MiB so the same config fits v7x.
    w_bytes = 2 * D * D * w.dtype.itemsize
    io_bytes = (2 * tile_m * D * x.dtype.itemsize) + (2 * tile_m * D * x.dtype.itemsize)
    vmem_limit = min(int(w_bytes + io_bytes) + (8 << 20), 64 << 20)

    out2 = pl.pallas_call(
        residual_kernel,
        out_shape=jax.ShapeDtypeStruct((m_pad, D), x.dtype),
        grid_spec=pltpu.PrefetchScalarGridSpec(
            num_scalar_prefetch=0,
            grid=(grid_m,),
            in_specs=[
                pl.BlockSpec((tile_m, D), lambda i: (i, 0)),  # x row tile
                pl.BlockSpec((D, D), lambda i: (0, 0)),       # W (resident)
                pl.BlockSpec((1, D), lambda i: (0, 0)),       # bias
                pl.BlockSpec((1, D), lambda i: (0, 0)),       # gamma
                pl.BlockSpec((1, D), lambda i: (0, 0)),       # beta
            ],
            out_specs=pl.BlockSpec((tile_m, D), lambda i: (i, 0)),
        ),
        compiler_params=pltpu.CompilerParams(
            dimension_semantics=("parallel",),   # row grid shards across TCs on v7x
            vmem_limit_bytes=vmem_limit,
        ),
    )(x2, w, b2, g2, beta2)

    return out2[:M].reshape(B, S, D)


def reference_forward(x, w, b, gamma, beta):
    y = jnp.einsum("bsd,de->bse", x.astype(jnp.float32), w.astype(jnp.float32)) + b
    z = x.astype(jnp.float32) + y  # dropout = identity (eval)
    mean = jnp.mean(z, axis=-1, keepdims=True)
    var = jnp.mean((z - mean) ** 2, axis=-1, keepdims=True)
    return ((z - mean) / jnp.sqrt(var + EPS)) * gamma + beta


if __name__ == "__main__":
    key = jax.random.PRNGKey(0)
    # Small demo shapes; D = 128 keeps the output lane-dense (D % 128 == 0).
    B, S, D = 2, 8, 128

    kx, kw, kb = jax.random.split(key, 3)
    x = jax.random.normal(kx, (B, S, D), dtype=jnp.float32)
    # Deterministic synthetic parameters for the sublayer (Linear) and LayerNorm.
    w = jax.random.normal(kw, (D, D), dtype=jnp.float32) * 0.05
    b = jax.random.normal(kb, (D,), dtype=jnp.float32) * 0.01
    gamma = jnp.ones((D,), dtype=jnp.float32)   # nn.LayerNorm default init
    beta = jnp.zeros((D,), dtype=jnp.float32)

    fwd = jax.jit(functools.partial(residual_forward, tile_m=256))
    out = fwd(x, w, b, gamma, beta)
    out = jax.block_until_ready(out)

    ref = reference_forward(x, w, b, gamma, beta)
    assert out.shape == (B, S, D)
    assert jnp.allclose(out, ref.astype(out.dtype), atol=1e-4, rtol=1e-4)

    print("KERNEL_OK")
</pallas_src>

<mosaic_0001>
module attributes {stable_mosaic.version = 11 : i64} {
  func.func @residual_kernel(%arg0: i32, %arg1: memref<256x128xf32, #tpu.memory_space<vmem>>, %arg2: memref<128x128xf32, #tpu.memory_space<vmem>>, %arg3: memref<1x128xf32, #tpu.memory_space<vmem>>, %arg4: memref<1x128xf32, #tpu.memory_space<vmem>>, %arg5: memref<1x128xf32, #tpu.memory_space<vmem>>, %arg6: memref<256x128xf32, #tpu.memory_space<vmem>>) attributes {dimension_semantics = [#tpu.dimension_semantics<parallel>], iteration_bounds = array<i64: 1>, scalar_prefetch = 0 : i64, scratch_operands = 0 : i64, tpu.core_type = #tpu.core_type<tc>, window_params = [{transform_indices = @transform_0, window_bounds = array<i64: 256, 128>}, {pipeline_mode = #tpu.pipeline_mode<synchronous>, transform_indices = @transform_1, window_bounds = array<i64: 128, 128>}, {pipeline_mode = #tpu.pipeline_mode<synchronous>, transform_indices = @transform_2, window_bounds = array<i64: 1, 128>}, {pipeline_mode = #tpu.pipeline_mode<synchronous>, transform_indices = @transform_3, window_bounds = array<i64: 1, 128>}, {pipeline_mode = #tpu.pipeline_mode<synchronous>, transform_indices = @transform_4, window_bounds = array<i64: 1, 128>}, {transform_indices = @transform_5, window_bounds = array<i64: 256, 128>}]} {
    %c0 = arith.constant 0 : index
    %c0_0 = arith.constant 0 : index
    %0 = vector.load %arg1[%c0, %c0_0] : memref<256x128xf32, #tpu.memory_space<vmem>>, vector<256x128xf32>
    %c0_1 = arith.constant 0 : index
    %c0_2 = arith.constant 0 : index
    %1 = vector.load %arg2[%c0_1, %c0_2] : memref<128x128xf32, #tpu.memory_space<vmem>>, vector<128x128xf32>
    %cst = arith.constant dense<0.000000e+00> : vector<256x128xf32>
    %2 = tpu.matmul %0, %1, %cst {dimension_numbers = #tpu.dot_dimension_numbers<[1], [0], [0], [1], [0, 0, 1, 1], [], []>} : vector<256x128xf32>, vector<128x128xf32>, vector<256x128xf32> -> vector<256x128xf32>
    %c0_3 = arith.constant 0 : index
    %c0_4 = arith.constant 0 : index
    %3 = vector.load %arg3[%c0_3, %c0_4] : memref<1x128xf32, #tpu.memory_space<vmem>>, vector<1x128xf32>
    %4 = vector.broadcast %3 : vector<1x128xf32> to vector<256x128xf32>
    %5 = arith.addf %2, %4 : vector<256x128xf32>
    %6 = arith.addf %0, %5 : vector<256x128xf32>
    %cst_5 = arith.constant dense<0.000000e+00> : vector<256xf32>
    %7 = vector.multi_reduction <add>, %6, %cst_5 [1] : vector<256x128xf32> to vector<256xf32>
    %8 = vector.shape_cast %7 : vector<256xf32> to vector<256x1xf32>
    %cst_6 = arith.constant 7.812500e-03 : f32
    %9 = vector.broadcast %cst_6 : f32 to vector<256x1xf32>
    %10 = arith.mulf %8, %9 : vector<256x1xf32>
    %11 = vector.broadcast %10 : vector<256x1xf32> to vector<256x128xf32>
    %12 = arith.subf %6, %11 : vector<256x128xf32>
    %13 = arith.mulf %12, %12 : vector<256x128xf32>
    %cst_7 = arith.constant dense<0.000000e+00> : vector<256xf32>
    %14 = vector.multi_reduction <add>, %13, %cst_7 [1] : vector<256x128xf32> to vector<256xf32>
    %15 = vector.shape_cast %14 : vector<256xf32> to vector<256x1xf32>
    %cst_8 = arith.constant 7.812500e-03 : f32
    %16 = vector.broadcast %cst_8 : f32 to vector<256x1xf32>
    %17 = arith.mulf %15, %16 : vector<256x1xf32>
    %cst_9 = arith.constant 9.99999974E-6 : f32
    %18 = vector.broadcast %cst_9 : f32 to vector<256x1xf32>
    %19 = arith.addf %17, %18 : vector<256x1xf32>
    %20 = math.rsqrt %19 : vector<256x1xf32>
    %21 = vector.broadcast %20 : vector<256x1xf32> to vector<256x128xf32>
    %22 = arith.mulf %12, %21 : vector<256x128xf32>
    %c0_10 = arith.constant 0 : index
    %c0_11 = arith.constant 0 : index
    %23 = vector.load %arg4[%c0_10, %c0_11] : memref<1x128xf32, #tpu.memory_space<vmem>>, vector<1x128xf32>
    %24 = vector.broadcast %23 : vector<1x128xf32> to vector<256x128xf32>
    %25 = arith.mulf %22, %24 : vector<256x128xf32>
    %c0_12 = arith.constant 0 : index
    %c0_13 = arith.constant 0 : index
    %26 = vector.load %arg5[%c0_12, %c0_13] : memref<1x128xf32, #tpu.memory_space<vmem>>, vector<1x128xf32>
    %27 = vector.broadcast %26 : vector<1x128xf32> to vector<256x128xf32>
    %28 = arith.addf %25, %27 : vector<256x128xf32>
    %c0_14 = arith.constant 0 : index
    %c0_15 = arith.constant 0 : index
    %29 = vector.load %arg6[%c0_14, %c0_15] : memref<256x128xf32, #tpu.memory_space<vmem>>, vector<256x128xf32>
    tpu.vector_store %arg6[%c0_14, %c0_15], %28 {strides = array<i32>} : memref<256x128xf32, #tpu.memory_space<vmem>>, vector<256x128xf32>,
    return
  }
  func.func @transform_0(%arg0: i32) -> (i32, i32) {
    %c0_i32 = arith.constant 0 : i32
    %c0_i32_0 = arith.constant 0 : i32
    return %arg0, %c0_i32 : i32, i32
  }
  func.func @transform_1(%arg0: i32) -> (i32, i32) {
    %c0_i32 = arith.constant 0 : i32
    %c0_i32_0 = arith.constant 0 : i32
    %c0_i32_1 = arith.constant 0 : i32
    return %c0_i32, %c0_i32_0 : i32, i32
  }
  func.func @transform_2(%arg0: i32) -> (i32, i32) {
    %c0_i32 = arith.constant 0 : i32
    %c0_i32_0 = arith.constant 0 : i32
    %c0_i32_1 = arith.constant 0 : i32
    return %c0_i32, %c0_i32_0 : i32, i32
  }
  func.func @transform_3(%arg0: i32) -> (i32, i32) {
    %c0_i32 = arith.constant 0 : i32
    %c0_i32_0 = arith.constant 0 : i32
    %c0_i32_1 = arith.constant 0 : i32
    return %c0_i32, %c0_i32_0 : i32, i32
  }
  func.func @transform_4(%arg0: i32) -> (i32, i32) {
    %c0_i32 = arith.constant 0 : i32
    %c0_i32_0 = arith.constant 0 : i32
    %c0_i32_1 = arith.constant 0 : i32
    return %c0_i32, %c0_i32_0 : i32, i32
  }
  func.func @transform_5(%arg0: i32) -> (i32, i32) {
    %c0_i32 = arith.constant 0 : i32
    %c0_i32_0 = arith.constant 0 : i32
    return %arg0, %c0_i32 : i32, i32
  }
}

</mosaic_0001>

<bundles_post_ra>
// kernel: residual_forward.1
= control target key start
LH: loop header
LB: loop body
LE: loop exit
PB: predicated region body
PF: predicated region fallthrough
CT: control target
= control target key end

     0   :  { %s1838_s1 = inlined_call_operand.vmem [shape: f32[128,128], index: 1, kind: input, shape index: {}]   ;;  %s1839_s0 = inlined_call_operand.vmem [shape: f32[256,128], index: 0, kind: input, shape index: {}]   ;;  %s1840_s2 = inlined_call_operand.vmem [shape: f32[1,128], index: 2, kind: input, shape index: {}]   ;;  %s1841_s3 = inlined_call_operand.vmem [shape: f32[1,128], index: 3, kind: input, shape index: {}]   ;;  %s1842_s4 = inlined_call_operand.vmem [shape: f32[1,128], index: 4, kind: input, shape index: {}]   ;;  %s1843_s5 = inlined_call_operand.vmem [shape: f32[256,128], index: 5, kind: output, shape index: {}]  }
   0x1   :  { %v52_v0 = vld [vmem:[%s1838_s1] sm:$0xff]  ;;  %v53_v1 = vld [vmem:[%s1838_s1 + $0x8] sm:$0xff]  ;;  %v54_v2 = vld [vmem:[%s1838_s1 + $0x10] sm:$0xff] }
   0x2   :  { %v929_v3 = vpack.c.bf16 %v53_v1, %v52_v0  ;;  %v55_v4 = vld [vmem:[%s1838_s1 + $0x18] sm:$0xff]  ;;  %v56_v6 = vld [vmem:[%s1838_s1 + $0x20] sm:$0xff]  ;;  %v57_v7 = vld [vmem:[%s1838_s1 + $0x28] sm:$0xff] }
   0x3   :  { %v933_v5 = vpack.c.bf16 %v55_v4, %v54_v2  ;;  %v937_v8 = vpack.c.bf16 %v57_v7, %v56_v6  ;;  %v1092_v9 = vld [vmem:[%s1839_s0] sm:$0xff]  ;;  %v58_v11 = vld [vmem:[%s1838_s1 + $0x30] sm:$0xff]  ;;  %v59_v12 = vld [vmem:[%s1838_s1 + $0x38] sm:$0xff] }
   0x4   :  { %930 = vmatprep.subr.bf16.mxu0 %v929_v3  ;;  %961 = vmatprep.subr.bf16.mxu1 %v929_v3  ;;  %v1097_v10 = vld [vmem:[%s1839_s0 + $0x80] sm:$0xff]  ;;  %v941_v13 = vpack.c.bf16 %v59_v12, %v58_v11  ;;  %v61_v15 = vld [vmem:[%s1838_s1 + $0x48] sm:$0xff]  ;;  %v62_v17 = vld [vmem:[%s1838_s1 + $0x50] sm:$0xff] }
   0x5   :  { %932 = vmatpush3.bf16.msra.mxu0 %v929_v3  ;;  %969 = vmatpush3.bf16.msra.mxu1 %v929_v3  ;;  %v60_v14 = vld [vmem:[%s1838_s1 + $0x40] sm:$0xff]  ;;  %v63_v18 = vld [vmem:[%s1838_s1 + $0x58] sm:$0xff]  ;;  %v65_v21 = vld [vmem:[%s1838_s1 + $0x68] sm:$0xff] }
   0x6   :  { %934 = vmatprep.subr.bf16.mxu0 %v933_v5  ;;  %962 = vmatprep.subr.bf16.mxu1 %v933_v5  ;;  %v945_v16 = vpack.c.bf16 %v61_v15, %v60_v14  ;;  %v949_v19 = vpack.c.bf16 %v63_v18, %v62_v17  ;;  %v64_v20 = vld [vmem:[%s1838_s1 + $0x60] sm:$0xff]  ;;  %v66_v23 = vld [vmem:[%s1838_s1 + $0x70] sm:$0xff]  ;;  %v67_v24 = vld [vmem:[%s1838_s1 + $0x78] sm:$0xff] }
   0x7   :  { %881 = vmatprep.mubr.f32.mxu0 %v1092_v9  ;;  %905 = vmatprep.mubr.f32.mxu1 %v1097_v10  ;;  %v953_v22 = vpack.c.bf16 %v65_v21, %v64_v20  ;;  %v957_v25 = vpack.c.bf16 %v67_v24, %v66_v23  ;;  %v1134_v26 = vld [vmem:[%s1839_s0 + $0x8] sm:$0xff]  ;;  %v1144_v28 = vld [vmem:[%s1839_s0 + $0x10] sm:$0xff]  ;;  %v1157_v30 = vld [vmem:[%s1839_s0 + $0x18] sm:$0xff] }
   0x8   :  { %v1139_v27 = vld [vmem:[%s1839_s0 + $0x88] sm:$0xff]  ;;  %v1149_v29 = vld [vmem:[%s1839_s0 + $0x90] sm:$0xff]  ;;  %v1163_v31 = vld [vmem:[%s1839_s0 + $0x98] sm:$0xff] }
   0x9   :  { %936 = vmatpush3.bf16.msra.mxu0 %v933_v5  ;;  %970 = vmatpush3.bf16.msra.mxu1 %v933_v5  ;;  %v1168_v32 = vld [vmem:[%s1839_s0 + $0x20] sm:$0xff]  ;;  %v1181_v34 = vld [vmem:[%s1839_s0 + $0x28] sm:$0xff]  ;;  %v1192_v36 = vld [vmem:[%s1839_s0 + $0x30] sm:$0xff] }
   0xa   :  { %938 = vmatprep.subr.bf16.mxu0 %v937_v8  ;;  %963 = vmatprep.subr.bf16.mxu1 %v937_v8  ;;  %v1173_v33 = vld [vmem:[%s1839_s0 + $0xa0] sm:$0xff]  ;;  %v1187_v35 = vld [vmem:[%s1839_s0 + $0xa8] sm:$0xff]  ;;  %v1197_v37 = vld [vmem:[%s1839_s0 + $0xb0] sm:$0xff] }
   0xb   :  { %v1205_v38 = vld [vmem:[%s1839_s0 + $0x38] sm:$0xff]  ;;  %v1216_v40 = vld [vmem:[%s1839_s0 + $0x40] sm:$0xff]  ;;  %v1229_v42 = vld [vmem:[%s1839_s0 + $0x48] sm:$0xff] }
   0xc   :  { %v1211_v39 = vld [vmem:[%s1839_s0 + $0xb8] sm:$0xff]  ;;  %v1221_v41 = vld [vmem:[%s1839_s0 + $0xc0] sm:$0xff]  ;;  %v1235_v43 = vld [vmem:[%s1839_s0 + $0xc8] sm:$0xff] }
   0xd   :  { %940 = vmatpush3.bf16.msra.mxu0 %v937_v8  ;;  %971 = vmatpush3.bf16.msra.mxu1 %v937_v8  ;;  %v1240_v44 = vld [vmem:[%s1839_s0 + $0x50] sm:$0xff]  ;;  %v1253_v46 = vld [vmem:[%s1839_s0 + $0x58] sm:$0xff]  ;;  %v1264_v48 = vld [vmem:[%s1839_s0 + $0x60] sm:$0xff] }
   0xe   :  { %942 = vmatprep.subr.bf16.mxu0 %v941_v13  ;;  %964 = vmatprep.subr.bf16.mxu1 %v941_v13  ;;  %v1245_v45 = vld [vmem:[%s1839_s0 + $0xd0] sm:$0xff]  ;;  %v1259_v47 = vld [vmem:[%s1839_s0 + $0xd8] sm:$0xff]  ;;  %v1269_v49 = vld [vmem:[%s1839_s0 + $0xe0] sm:$0xff] }
   0xf   :  { %v1277_v50 = vld [vmem:[%s1839_s0 + $0x68] sm:$0xff]  ;;  %v1288_v52 = vld [vmem:[%s1839_s0 + $0x70] sm:$0xff]  ;;  %v1301_v54 = vld [vmem:[%s1839_s0 + $0x78] sm:$0xff] }
  0x10   :  { %v1283_v51 = vld [vmem:[%s1839_s0 + $0xe8] sm:$0xff]  ;;  %v1293_v53 = vld [vmem:[%s1839_s0 + $0xf0] sm:$0xff]  ;;  %v1307_v55 = vld [vmem:[%s1839_s0 + $0xf8] sm:$0xff] }
  0x11   :  { %944 = vmatpush3.bf16.msra.mxu0 %v941_v13  ;;  %972 = vmatpush3.bf16.msra.mxu1 %v941_v13  ;;  %v1314_v56 = vld [vmem:[%s1840_s2] ss:$0 sm:$0xff] }
  0x12   :  { %946 = vmatprep.subr.bf16.mxu0 %v945_v16  ;;  %965 = vmatprep.subr.bf16.mxu1 %v945_v16 }
  0x15   :  { %948 = vmatpush3.bf16.msra.mxu0 %v945_v16  ;;  %973 = vmatpush3.bf16.msra.mxu1 %v945_v16 }
  0x16   :  { %950 = vmatprep.subr.bf16.mxu0 %v949_v19  ;;  %966 = vmatprep.subr.bf16.mxu1 %v949_v19 }
  0x19   :  { %952 = vmatpush3.bf16.msra.mxu0 %v949_v19  ;;  %974 = vmatpush3.bf16.msra.mxu1 %v949_v19 }
  0x1a   :  { %954 = vmatprep.subr.bf16.mxu0 %v953_v22  ;;  %967 = vmatprep.subr.bf16.mxu1 %v953_v22 }
  0x1d   :  { %956 = vmatpush3.bf16.msra.mxu0 %v953_v22  ;;  %975 = vmatpush3.bf16.msra.mxu1 %v953_v22 }
  0x1e   :  { %958 = vmatprep.subr.bf16.mxu0 %v957_v25  ;;  %968 = vmatprep.subr.bf16.mxu1 %v957_v25 }
  0x21   :  { %960 = vmatpush3.bf16.msra.mxu0 %v957_v25  ;;  %976 = vmatpush3.bf16.msra.mxu1 %v957_v25 }
  0x24   :  { %882 = vmatmul.mubr.f32.vlgmr.msra.gmra.mrb[0].mxu0 %v1134_v26  ;;  %906 = vmatmul.mubr.f32.vlgmr.msra.gmra.mrb[0].mxu1 %v1139_v27 }
  0x25   :  { %884 = vmatprep.mubr.f32.mxu0 %v1144_v28  ;;  %908 = vmatprep.mubr.f32.mxu1 %v1149_v29 }
  0x28   :  { %885 = vmatmul.mubr.f32.gmra.mrb[2].mxu0 %v1157_v30  ;;  %909 = vmatmul.mubr.f32.gmra.mrb[2].mxu1 %v1163_v31 }
  0x29   :  { %887 = vmatprep.mubr.f32.mxu0 %v1168_v32  ;;  %911 = vmatprep.mubr.f32.mxu1 %v1173_v33 }
  0x2c   :  { %888 = vmatmul.mubr.f32.gmra.mrb[4].mxu0 %v1181_v34  ;;  %912 = vmatmul.mubr.f32.gmra.mrb[4].mxu1 %v1187_v35 }
  0x2d   :  { %890 = vmatprep.mubr.f32.mxu0 %v1192_v36  ;;  %914 = vmatprep.mubr.f32.mxu1 %v1197_v37 }
  0x30   :  { %891 = vmatmul.mubr.f32.gmra.mrb[6].mxu0 %v1205_v38  ;;  %915 = vmatmul.mubr.f32.gmra.mrb[6].mxu1 %v1211_v39 }
  0x31   :  { %893 = vmatprep.mubr.f32.mxu0 %v1216_v40  ;;  %917 = vmatprep.mubr.f32.mxu1 %v1221_v41 }
  0x34   :  { %894 = vmatmul.mubr.f32.gmra.mrb[8].mxu0 %v1229_v42  ;;  %918 = vmatmul.mubr.f32.gmra.mrb[8].mxu1 %v1235_v43 }
  0x35   :  { %896 = vmatprep.mubr.f32.mxu0 %v1240_v44  ;;  %920 = vmatprep.mubr.f32.mxu1 %v1245_v45 }
  0x38   :  { %897 = vmatmul.mubr.f32.gmra.mrb[10].mxu0 %v1253_v46  ;;  %921 = vmatmul.mubr.f32.gmra.mrb[10].mxu1 %v1259_v47 }
  0x39   :  { %899 = vmatprep.mubr.f32.mxu0 %v1264_v48  ;;  %923 = vmatprep.mubr.f32.mxu1 %v1269_v49 }
  0x3c   :  { %900 = vmatmul.mubr.f32.gmra.mrb[12].mxu0 %v1277_v50  ;;  %924 = vmatmul.mubr.f32.gmra.mrb[12].mxu1 %v1283_v51 }
  0x3d   :  { %902 = vmatprep.mubr.f32.mxu0 %v1288_v52  ;;  %926 = vmatprep.mubr.f32.mxu1 %v1293_v53 }
  0x40   :  { %903 = vmatmul.mubr.f32.gmra.mrb[14].mxu0 %v1301_v54  ;;  %927 = vmatmul.mubr.f32.gmra.mrb[14].mxu1 %v1307_v55 }
  0xf7   :  { %v883_v57 = vpop.f32.mrb[0].mxu0  ;;  %v907_v58 = vpop.f32.mrb[0].mxu1 }
  0xf8   :  { %v147_v59 = vadd.f32 %v883_v57, %v1314_v56  ;;  %v227_v60 = vadd.f32 %v907_v58, %v1314_v56  ;;  %v141_v61 = vpop.f32.mrb[1].mxu0  ;;  %v221_v62 = vpop.f32.mrb[1].mxu1 }
  0xf9   :  { %v142_v63 = vadd.f32 %v1314_v56, %v141_v61  ;;  %v222_v8 = vadd.f32 %v1314_v56, %v221_v62 }
  0xfa   :  { %v1320_v0 = vadd.f32 %v227_v60, %v1139_v27  ;;  %v1323_v1 = vadd.f32 %v147_v59, %v1134_v26 }
  0xfb   :  { %v886_v2 = vpop.f32.mrb[2].mxu0  ;;  %v910_v3 = vpop.f32.mrb[2].mxu1  ;;  %v1334_v12 = vadd.f32 %v142_v63, %v1092_v9  ;;  %v1344_v20 = vadd.f32 %v222_v8, %v1097_v10 }
  0xfc   :  { %v157_v4 = vadd.f32 %v886_v2, %v1314_v56  ;;  %366 = vadd.xlane.f32.xlu1 %v1320_v0  ;;  %334 = vadd.xlane.f32.xlu0 %v1323_v1  ;;  %v151_v5 = vpop.f32.mrb[3].mxu0  ;;  %v237_v6 = vadd.f32 %v910_v3, %v1314_v56  ;;  %v231_v7 = vpop.f32.mrb[3].mxu1 }
  0xfd   :  { %v152_v18 = vadd.f32 %v1314_v56, %v151_v5  ;;  %v232_v19 = vadd.f32 %v1314_v56, %v231_v7 }
  0xfe   :  { %v1331_v11 = vadd.f32 %v157_v4, %v1157_v30  ;;  %v1339_v15 = vadd.f32 %v237_v6, %v1163_v31 }
  0xff   :  { %v889_v13 = vpop.f32.mrb[4].mxu0  ;;  %v913_v14 = vpop.f32.mrb[4].mxu1  ;;  %v1351_v26 = vadd.f32 %v152_v18, %v1144_v28  ;;  %v1354_v27 = vadd.f32 %v232_v19, %v1149_v29 }
 0x100   :  { %338 = vadd.xlane.f32.xlu1 %v1331_v11  ;;  %332 = vadd.xlane.f32.xlu0 %v1334_v12  ;;  %v161_v16 = vpop.f32.mrb[5].mxu0  ;;  %v241_v17 = vpop.f32.mrb[5].mxu1  ;;  %v167_v22 = vadd.f32 %v889_v13, %v1314_v56  ;;  %v247_v10 = vadd.f32 %v913_v14, %v1314_v56 }
 0x101   :  { %v162_v23 = vadd.f32 %v1314_v56, %v161_v16  ;;  %v242_v57 = vadd.f32 %v1314_v56, %v241_v17 }
 0x102   :  { %v1361_v58 = vadd.f32 %v167_v22, %v1181_v34  ;;  %v1367_v29 = vadd.f32 %v247_v10, %v1187_v35 }
 0x103   :  { %v892_v9 = vpop.f32.mrb[6].mxu0  ;;  %v916_v21 = vpop.f32.mrb[6].mxu1  ;;  %v1364_v59 = vadd.f32 %v162_v23, %v1168_v32  ;;  %v1374_v34 = vadd.f32 %v242_v57, %v1173_v33 }
 0x104   :  { %370 = vadd.xlane.f32.xlu1 %v1339_v15  ;;  %364 = vadd.xlane.f32.xlu0 %v1344_v20  ;;  %v171_v24 = vpop.f32.mrb[7].mxu0  ;;  %v251_v25 = vpop.f32.mrb[7].mxu1  ;;  %v177_v63 = vadd.f32 %v892_v9, %v1314_v56  ;;  %v257_v4 = vadd.f32 %v916_v21, %v1314_v56 }
 0x105   :  { %v172_v2 = vadd.f32 %v1314_v56, %v171_v24  ;;  %v252_v6 = vadd.f32 %v1314_v56, %v251_v25 }
 0x106   :  { %v1381_v7 = vadd.f32 %v177_v63, %v1205_v38  ;;  %v1387_v14 = vadd.f32 %v257_v4, %v1211_v39 }
 0x107   :  { %v895_v30 = vpop.f32.mrb[8].mxu0  ;;  %v919_v31 = vpop.f32.mrb[8].mxu1  ;;  %v1384_v8 = vadd.f32 %v172_v2, %v1192_v36  ;;  %v1394_v38 = vadd.f32 %v252_v6, %v1197_v37 }
 0x108   :  { %336 = vadd.xlane.f32.xlu1 %v1351_v26  ;;  %368 = vadd.xlane.f32.xlu0 %v1354_v27  ;;  %v181_v28 = vpop.f32.mrb[9].mxu0  ;;  %v261_v60 = vpop.f32.mrb[9].mxu1  ;;  %v187_v18 = vadd.f32 %v895_v30, %v1314_v56  ;;  %v267_v21 = vadd.f32 %v919_v31, %v1314_v56 }
 0x109   :  { %v182_v19 = vadd.f32 %v1314_v56, %v181_v28  ;;  %v262_v39 = vadd.f32 %v1314_v56, %v261_v60 }
 0x10a   :  { %v1401_v22 = vadd.f32 %v187_v18, %v1229_v42  ;;  %v1407_v24 = vadd.f32 %v267_v21, %v1235_v43 }
 0x10b   :  { %v898_v61 = vpop.f32.mrb[10].mxu0  ;;  %v922_v62 = vpop.f32.mrb[10].mxu1  ;;  %v1404_v23 = vadd.f32 %v182_v19, %v1216_v40  ;;  %v1414_v10 = vadd.f32 %v262_v39, %v1221_v41 }
 0x10c   :  { %342 = vadd.xlane.f32.xlu1 %v1361_v58  ;;  %340 = vadd.xlane.f32.xlu0 %v1364_v59  ;;  %v191_v32 = vpop.f32.mrb[11].mxu0  ;;  %v271_v3 = vpop.f32.mrb[11].mxu1  ;;  %v197_v37 = vadd.f32 %v898_v61, %v1314_v56  ;;  %v277_v42 = vadd.f32 %v922_v62, %v1314_v56 }
 0x10d   :  { %v192_v25 = vadd.f32 %v1314_v56, %v191_v32  ;;  %v272_v40 = vadd.f32 %v1314_v56, %v271_v3 }
 0x10e   :  { %v1421_v43 = vadd.f32 %v197_v37, %v1253_v46  ;;  %v1427_v31 = vadd.f32 %v277_v42, %v1259_v47 }
 0x10f   :  { %v901_v5 = vpop.f32.mrb[12].mxu0  ;;  %v925_v35 = vpop.f32.mrb[12].mxu1  ;;  %v1424_v30 = vadd.f32 %v192_v25, %v1240_v44  ;;  %v1434_v28 = vadd.f32 %v272_v40, %v1245_v45 }
 0x110   :  { %374 = vadd.xlane.f32.xlu1 %v1367_v29  ;;  %372 = vadd.xlane.f32.xlu0 %v1374_v34  ;;  %v201_v33 = vpop.f32.mrb[13].mxu0  ;;  %v281_v13 = vpop.f32.mrb[13].mxu1  ;;  %v207_v41 = vadd.f32 %v901_v5, %v1314_v56  ;;  %v287_v46 = vadd.f32 %v925_v35, %v1314_v56 }
 0x111   :  { %v202_v57 = vadd.f32 %v1314_v56, %v201_v33  ;;  %v282_v44 = vadd.f32 %v1314_v56, %v281_v13 }
 0x112   :  { %v1441_v47 = vadd.f32 %v207_v41, %v1277_v50  ;;  %v1447_v61 = vadd.f32 %v287_v46, %v1283_v51 }
 0x113   :  { %v904_v16 = vpop.f32.mrb[14].mxu0  ;;  %v928_v17 = vpop.f32.mrb[14].mxu1  ;;  %v1444_v60 = vadd.f32 %v202_v57, %v1264_v48  ;;  %v1454_v63 = vadd.f32 %v282_v44, %v1269_v49 }
 0x114   :  { %346 = vadd.xlane.f32.xlu1 %v1381_v7  ;;  %344 = vadd.xlane.f32.xlu0 %v1384_v8  ;;  %v211_v36 = vpop.f32.mrb[15].mxu0  ;;  %v291_v9 = vpop.f32.mrb[15].mxu1  ;;  %v217_v45 = vadd.f32 %v904_v16, %v1314_v56  ;;  %v297_v50 = vadd.f32 %v928_v17, %v1314_v56 }
 0x115   :  { %v212_v62 = vadd.f32 %v1314_v56, %v211_v36  ;;  %v292_v48 = vadd.f32 %v1314_v56, %v291_v9 }
 0x116   :  { %v1461_v51 = vadd.f32 %v217_v45, %v1301_v54  ;;  %v1469_v49 = vadd.f32 %v297_v50, %v1307_v55 }
 0x117   :  { %v1464_v2 = vadd.f32 %v212_v62, %v1288_v52  ;;  %v1472_v32 = vadd.f32 %v292_v48, %v1293_v53 }
 0x118   :  { %378 = vadd.xlane.f32.xlu1 %v1387_v14  ;;  %376 = vadd.xlane.f32.xlu0 %v1394_v38 }
 0x11c   :  { %350 = vadd.xlane.f32.xlu1 %v1401_v22  ;;  %348 = vadd.xlane.f32.xlu0 %v1404_v23 }
 0x120   :  { %382 = vadd.xlane.f32.xlu1 %v1407_v24  ;;  %380 = vadd.xlane.f32.xlu0 %v1414_v10 }
 0x124   :  { %354 = vadd.xlane.f32.xlu1 %v1421_v43  ;;  %352 = vadd.xlane.f32.xlu0 %v1424_v30 }
 0x128   :  { %386 = vadd.xlane.f32.xlu1 %v1427_v31  ;;  %384 = vadd.xlane.f32.xlu0 %v1434_v28 }
 0x12c   :  { %358 = vadd.xlane.f32.xlu1 %v1441_v47  ;;  %356 = vadd.xlane.f32.xlu0 %v1444_v60 }
 0x130   :  { %390 = vadd.xlane.f32.xlu1 %v1447_v61  ;;  %388 = vadd.xlane.f32.xlu0 %v1454_v63 }
 0x134   :  { %362 = vadd.xlane.f32.xlu1 %v1461_v51  ;;  %360 = vadd.xlane.f32.xlu0 %v1464_v2 }
 0x138   :  { %394 = vadd.xlane.f32.xlu1 %v1469_v49  ;;  %392 = vadd.xlane.f32.xlu0 %v1472_v32 }
 0x189   :  { %v367_v56 = vpop.xlane.xlu1 %366  ;;  %v335_v54 = vpop.xlane.xlu0 %334 }
 0x18a   :  { %v413_v3 = vmul.f32 0.0078125, %v367_v56  ;;  %v397_v4 = vmul.f32 0.0078125, %v335_v54 }
 0x18c   :  { %v1477_v52 = vsub.f32 %v1323_v1, %v397_v4  ;;  %v1480_v6 = vsub.f32 %v1320_v0, %v413_v3 }
 0x18d   :  { %v339_v5 = vpop.xlane.xlu1 %338  ;;  %v333_v35 = vpop.xlane.xlu0 %332 }
 0x18e   :  { %v399_v55 = vmul.f32 0.0078125, %v339_v5  ;;  %v396_v33 = vmul.f32 0.0078125, %v333_v35  ;;  %v461_v53 = vmul.f32 %v1477_v52, %v1477_v52  ;;  %v477_v0 = vmul.f32 %v1480_v6, %v1480_v6 }
 0x190   :  { %v1485_v13 = vsub.f32 %v1334_v12, %v396_v33  ;;  %494 = vadd.xlane.f32.xlu1 %v461_v53  ;;  %v1488_v16 = vsub.f32 %v1331_v11, %v399_v55 }
 0x191   :  { %v371_v17 = vpop.xlane.xlu1 %370  ;;  %v365_v1 = vpop.xlane.xlu0 %364 }
 0x192   :  { %v415_v18 = vmul.f32 0.0078125, %v371_v17  ;;  %v412_v19 = vmul.f32 0.0078125, %v365_v1  ;;  %v460_v36 = vmul.f32 %v1485_v13, %v1485_v13  ;;  %v463_v11 = vmul.f32 %v1488_v16, %v1488_v16 }
 0x194   :  { %v1495_v9 = vsub.f32 %v1344_v20, %v412_v19  ;;  %526 = vadd.xlane.f32.xlu1 %v477_v0  ;;  %492 = vadd.xlane.f32.xlu0 %v460_v36  ;;  %v1500_v39 = vsub.f32 %v1339_v15, %v415_v18 }
 0x195   :  { %v337_v12 = vpop.xlane.xlu1 %336  ;;  %v369_v21 = vpop.xlane.xlu0 %368 }
 0x196   :  { %v398_v37 = vmul.f32 0.0078125, %v337_v12  ;;  %v414_v25 = vmul.f32 0.0078125, %v369_v21  ;;  %v476_v42 = vmul.f32 %v1495_v9, %v1495_v9  ;;  %v479_v15 = vmul.f32 %v1500_v39, %v1500_v39 }
 0x198   :  { %v1505_v40 = vsub.f32 %v1351_v26, %v398_v37  ;;  %498 = vadd.xlane.f32.xlu1 %v463_v11  ;;  %524 = vadd.xlane.f32.xlu0 %v476_v42  ;;  %v1508_v20 = vsub.f32 %v1354_v27, %v414_v25 }
 0x199   :  { %v343_v41 = vpop.xlane.xlu1 %342  ;;  %v341_v57 = vpop.xlane.xlu0 %340 }
 0x19a   :  { %v401_v46 = vmul.f32 0.0078125, %v343_v41  ;;  %v400_v44 = vmul.f32 0.0078125, %v341_v57  ;;  %v462_v45 = vmul.f32 %v1505_v40, %v1505_v40  ;;  %v478_v27 = vmul.f32 %v1508_v20, %v1508_v20 }
 0x19c   :  { %v1515_v62 = vsub.f32 %v1361_v58, %v401_v46  ;;  %530 = vadd.xlane.f32.xlu1 %v479_v15  ;;  %496 = vadd.xlane.f32.xlu0 %v462_v45  ;;  %v1520_v48 = vsub.f32 %v1364_v59, %v400_v44 }
 0x19d   :  { %v375_v26 = vpop.xlane.xlu1 %374  ;;  %v373_v50 = vpop.xlane.xlu0 %372 }
 0x19e   :  { %v417_v56 = vmul.f32 0.0078125, %v375_v26  ;;  %v416_v54 = vmul.f32 0.0078125, %v373_v50  ;;  %v465_v3 = vmul.f32 %v1515_v62, %v1515_v62  ;;  %v464_v53 = vmul.f32 %v1520_v48, %v1520_v48 }
 0x1a0   :  { %v1525_v4 = vsub.f32 %v1367_v29, %v417_v56  ;;  %502 = vadd.xlane.f32.xlu1 %v465_v3  ;;  %528 = vadd.xlane.f32.xlu0 %v478_v27  ;;  %v1528_v58 = vsub.f32 %v1374_v34, %v416_v54 }
 0x1a1   :  { %v347_v5 = vpop.xlane.xlu1 %346  ;;  %v345_v35 = vpop.xlane.xlu0 %344 }
 0x1a2   :  { %v403_v55 = vmul.f32 0.0078125, %v347_v5  ;;  %v402_v33 = vmul.f32 0.0078125, %v345_v35  ;;  %v481_v59 = vmul.f32 %v1525_v4, %v1525_v4  ;;  %v480_v34 = vmul.f32 %v1528_v58, %v1528_v58 }
 0x1a4   :  { %v1535_v17 = vsub.f32 %v1381_v7, %v403_v55  ;;  %534 = vadd.xlane.f32.xlu1 %v481_v59  ;;  %500 = vadd.xlane.f32.xlu0 %v464_v53  ;;  %v1540_v18 = vsub.f32 %v1384_v8, %v402_v33 }
 0x1a5   :  { %v379_v29 = vpop.xlane.xlu1 %378  ;;  %v377_v1 = vpop.xlane.xlu0 %376 }
 0x1a6   :  { %v419_v19 = vmul.f32 0.0078125, %v379_v29  ;;  %v418_v0 = vmul.f32 0.0078125, %v377_v1  ;;  %v467_v36 = vmul.f32 %v1535_v17, %v1535_v17  ;;  %v466_v42 = vmul.f32 %v1540_v18, %v1540_v18 }
 0x1a8   :  { %v1545_v12 = vsub.f32 %v1387_v14, %v419_v19  ;;  %506 = vadd.xlane.f32.xlu1 %v467_v36  ;;  %532 = vadd.xlane.f32.xlu0 %v480_v34  ;;  %v1548_v7 = vsub.f32 %v1394_v38, %v418_v0 }
 0x1a9   :  { %v351_v21 = vpop.xlane.xlu1 %350  ;;  %v349_v11 = vpop.xlane.xlu0 %348 }
 0x1aa   :  { %v405_v37 = vmul.f32 0.0078125, %v351_v21  ;;  %v404_v25 = vmul.f32 0.0078125, %v349_v11  ;;  %v483_v8 = vmul.f32 %v1545_v12, %v1545_v12  ;;  %v482_v38 = vmul.f32 %v1548_v7, %v1548_v7 }
 0x1ac   :  { %v1555_v41 = vsub.f32 %v1401_v22, %v405_v37  ;;  %538 = vadd.xlane.f32.xlu1 %v483_v8  ;;  %504 = vadd.xlane.f32.xlu0 %v466_v42  ;;  %v1560_v46 = vsub.f32 %v1404_v23, %v404_v25 }
 0x1ad   :  { %v383_v14 = vpop.xlane.xlu1 %382  ;;  %v381_v57 = vpop.xlane.xlu0 %380 }
 0x1ae   :  { %v421_v44 = vmul.f32 0.0078125, %v383_v14  ;;  %v420_v15 = vmul.f32 0.0078125, %v381_v57  ;;  %v469_v45 = vmul.f32 %v1555_v41, %v1555_v41  ;;  %v468_v3 = vmul.f32 %v1560_v46, %v1560_v46 }
 0x1b0   :  { %v1565_v26 = vsub.f32 %v1407_v24, %v421_v44  ;;  %510 = vadd.xlane.f32.xlu1 %v469_v45  ;;  %536 = vadd.xlane.f32.xlu0 %v482_v38  ;;  %v1568_v22 = vsub.f32 %v1414_v10, %v420_v15 }
 0x1b1   :  { %v355_v50 = vpop.xlane.xlu1 %354  ;;  %v353_v27 = vpop.xlane.xlu0 %352 }
 0x1b2   :  { %v407_v56 = vmul.f32 0.0078125, %v355_v50  ;;  %v406_v54 = vmul.f32 0.0078125, %v353_v27  ;;  %v485_v23 = vmul.f32 %v1565_v26, %v1565_v26  ;;  %v484_v10 = vmul.f32 %v1568_v22, %v1568_v22 }
 0x1b4   :  { %v1575_v5 = vsub.f32 %v1421_v43, %v407_v56  ;;  %542 = vadd.xlane.f32.xlu1 %v485_v23  ;;  %508 = vadd.xlane.f32.xlu0 %v468_v3  ;;  %v1580_v55 = vsub.f32 %v1424_v30, %v406_v54 }
 0x1b5   :  { %v387_v24 = vpop.xlane.xlu1 %386  ;;  %v385_v35 = vpop.xlane.xlu0 %384 }
 0x1b6   :  { %v423_v33 = vmul.f32 0.0078125, %v387_v24  ;;  %v422_v59 = vmul.f32 0.0078125, %v385_v35  ;;  %v471_v53 = vmul.f32 %v1575_v5, %v1575_v5  ;;  %v470_v36 = vmul.f32 %v1580_v55, %v1580_v55 }
 0x1b8   :  { %v1585_v29 = vsub.f32 %v1427_v31, %v423_v33  ;;  %514 = vadd.xlane.f32.xlu1 %v471_v53  ;;  %540 = vadd.xlane.f32.xlu0 %v484_v10  ;;  %v1588_v43 = vsub.f32 %v1434_v28, %v422_v59 }
 0x1b9   :  { %v359_v1 = vpop.xlane.xlu1 %358  ;;  %v357_v34 = vpop.xlane.xlu0 %356 }
 0x1ba   :  { %v409_v19 = vmul.f32 0.0078125, %v359_v1  ;;  %v408_v0 = vmul.f32 0.0078125, %v357_v34  ;;  %v487_v30 = vmul.f32 %v1585_v29, %v1585_v29  ;;  %v486_v28 = vmul.f32 %v1588_v43, %v1588_v43 }
 0x1bc   :  { %v1595_v21 = vsub.f32 %v1441_v47, %v409_v19  ;;  %546 = vadd.xlane.f32.xlu1 %v487_v30  ;;  %512 = vadd.xlane.f32.xlu0 %v470_v36  ;;  %v1600_v37 = vsub.f32 %v1444_v60, %v408_v0 }
 0x1bd   :  { %v391_v31 = vpop.xlane.xlu1 %390  ;;  %v389_v11 = vpop.xlane.xlu0 %388 }
 0x1be   :  { %v425_v25 = vmul.f32 0.0078125, %v391_v31  ;;  %v424_v8 = vmul.f32 0.0078125, %v389_v11  ;;  %v473_v42 = vmul.f32 %v1595_v21, %v1595_v21  ;;  %v472_v45 = vmul.f32 %v1600_v37, %v1600_v37 }
 0x1c0   :  { %v1605_v14 = vsub.f32 %v1447_v61, %v425_v25  ;;  %518 = vadd.xlane.f32.xlu1 %v473_v42  ;;  %544 = vadd.xlane.f32.xlu0 %v486_v28  ;;  %v1608_v47 = vsub.f32 %v1454_v63, %v424_v8 }
 0x1c1   :  { %v363_v57 = vpop.xlane.xlu1 %362  ;;  %v361_v38 = vpop.xlane.xlu0 %360 }
 0x1c2   :  { %v411_v44 = vmul.f32 0.0078125, %v363_v57  ;;  %v410_v15 = vmul.f32 0.0078125, %v361_v38  ;;  %v489_v60 = vmul.f32 %v1605_v14, %v1605_v14  ;;  %v488_v63 = vmul.f32 %v1608_v47, %v1608_v47 }
 0x1c4   :  { %v1615_v50 = vsub.f32 %v1461_v51, %v411_v44  ;;  %550 = vadd.xlane.f32.xlu1 %v489_v60  ;;  %516 = vadd.xlane.f32.xlu0 %v472_v45  ;;  %v1620_v56 = vsub.f32 %v1464_v2, %v410_v15  ;;  %v1639_v15 = vld [vmem:[%s1841_s3] ss:$0 sm:$0xff] }
 0x1c5   :  { %v395_v61 = vpop.xlane.xlu1 %394  ;;  %v393_v27 = vpop.xlane.xlu0 %392 }
 0x1c6   :  { %v427_v54 = vmul.f32 0.0078125, %v395_v61  ;;  %v426_v23 = vmul.f32 0.0078125, %v393_v27  ;;  %v475_v3 = vmul.f32 %v1615_v50, %v1615_v50  ;;  %v474_v2 = vmul.f32 %v1620_v56, %v1620_v56 }
 0x1c8   :  { %v1625_v24 = vsub.f32 %v1469_v49, %v427_v54  ;;  %522 = vadd.xlane.f32.xlu1 %v475_v3  ;;  %548 = vadd.xlane.f32.xlu0 %v488_v63  ;;  %v1628_v51 = vsub.f32 %v1472_v32, %v426_v23  ;;  %v1645_v54 = vld [vmem:[%s1842_s4] ss:$0 sm:$0xff] }
 0x1ca   :  { %v491_v35 = vmul.f32 %v1625_v24, %v1625_v24  ;;  %v490_v10 = vmul.f32 %v1628_v51, %v1628_v51 }
 0x1cc   :  { %554 = vadd.xlane.f32.xlu1 %v491_v35  ;;  %520 = vadd.xlane.f32.xlu0 %v474_v2 }
 0x1d0   :  { %552 = vadd.xlane.f32.xlu0 %v490_v10 }
 0x21d   :  { %v495_v33 = vpop.xlane.xlu1 %494 }
 0x21e   :  { %v557_v49 = vmul.f32 0.0078125, %v495_v33 }
 0x220   :  { %v589_v59 = vadd.f32 1e-05, %v557_v49 }
 0x221   :  { %v527_v53 = vpop.xlane.xlu1 %526  ;;  %v493_v1 = vpop.xlane.xlu0 %492 }
 0x222   :  { %977 = vrsqrt.f32 %v589_v59  ;;  %v573_v32 = vmul.f32 0.0078125, %v527_v53  ;;  %v556_v34 = vmul.f32 0.0078125, %v493_v1 }
 0x224   :  { %v605_v19 = vadd.f32 1e-05, %v573_v32  ;;  %v588_v0 = vadd.f32 1e-05, %v556_v34 }
 0x225   :  { %v499_v30 = vpop.xlane.xlu1 %498  ;;  %v525_v36 = vpop.xlane.xlu0 %524 }
 0x226   :  { %979 = vrsqrt.f32 %v605_v19  ;;  %v559_v31 = vmul.f32 0.0078125, %v499_v30  ;;  %v572_v11 = vmul.f32 0.0078125, %v525_v36 }
 0x227   :  { %981 = vrsqrt.f32 %v588_v0 }
 0x228   :  { %v591_v28 = vadd.f32 1e-05, %v559_v31  ;;  %v604_v25 = vadd.f32 1e-05, %v572_v11 }
 0x229   :  { %v531_v8 = vpop.xlane.xlu1 %530  ;;  %v497_v42 = vpop.xlane.xlu0 %496 }
 0x22a   :  { %983 = vrsqrt.f32 %v591_v28  ;;  %v575_v57 = vmul.f32 0.0078125, %v531_v8  ;;  %v558_v38 = vmul.f32 0.0078125, %v497_v42 }
 0x22b   :  { %985 = vrsqrt.f32 %v604_v25 }
 0x22c   :  { %v978_v44 = vpop.eup %977  ;;  %v607_v60 = vadd.f32 1e-05, %v575_v57  ;;  %v590_v45 = vadd.f32 1e-05, %v558_v38 }
 0x22d   :  { %v653_v61 = vmul.f32 %v978_v44, %v1477_v52  ;;  %v503_v27 = vpop.xlane.xlu1 %502  ;;  %v529_v63 = vpop.xlane.xlu0 %528 }
 0x22e   :  { %987 = vrsqrt.f32 %v607_v60  ;;  %v561_v23 = vmul.f32 0.0078125, %v503_v27  ;;  %v574_v3 = vmul.f32 0.0078125, %v529_v63 }
 0x22f   :  { %v692_v35 = vmul.f32 %v1639_v15, %v653_v61  ;;  %989 = vrsqrt.f32 %v590_v45 }
 0x230   :  { %v980_v2 = vpop.eup %979  ;;  %v593_v10 = vadd.f32 1e-05, %v561_v23  ;;  %v606_v33 = vadd.f32 1e-05, %v574_v3 }
 0x231   :  { %v982_v49 = vpop.eup %981  ;;  %v731_v59 = vadd.f32 %v1645_v54, %v692_v35  ;;  %v669_v52 = vmul.f32 %v980_v2, %v1480_v6  ;;  %v535_v53 = vpop.xlane.xlu1 %534 }
 0x232   :  { %v501_v1 = vpop.xlane.xlu0 %500  ;;  %v652_v32 = vmul.f32 %v982_v49, %v1485_v13  ;;  %991 = vrsqrt.f32 %v593_v10  ;;  %v577_v34 = vmul.f32 0.0078125, %v535_v53 }
 0x233   :  { %v560_v19 = vmul.f32 0.0078125, %v501_v1  ;;  %763 = vst [vmem:[%s1843_s5 + $0x8] sm:$0xff] %v731_v59  ;;  %v708_v0 = vmul.f32 %v1639_v15, %v669_v52  ;;  %993 = vrsqrt.f32 %v606_v33 }
 0x234   :  { %v984_v30 = vpop.eup %983  ;;  %v691_v36 = vmul.f32 %v1639_v15, %v652_v32  ;;  %v609_v31 = vadd.f32 1e-05, %v577_v34 }
 0x235   :  { %v592_v11 = vadd.f32 1e-05, %v560_v19  ;;  %v986_v6 = vpop.eup %985  ;;  %v747_v28 = vadd.f32 %v1645_v54, %v708_v0  ;;  %v655_v13 = vmul.f32 %v984_v30, %v1488_v16  ;;  %v507_v25 = vpop.xlane.xlu1 %506 }
 0x236   :  { %v533_v8 = vpop.xlane.xlu0 %532  ;;  %v730_v42 = vadd.f32 %v1645_v54, %v691_v36  ;;  %v668_v57 = vmul.f32 %v986_v6, %v1495_v9  ;;  %995 = vrsqrt.f32 %v609_v31  ;;  %v563_v38 = vmul.f32 0.0078125, %v507_v25 }
 0x237   :  { %779 = vst [vmem:[%s1843_s5 + $0x88] sm:$0xff] %v747_v28  ;;  %v694_v44 = vmul.f32 %v1639_v15, %v655_v13  ;;  %997 = vrsqrt.f32 %v592_v11  ;;  %v576_v60 = vmul.f32 0.0078125, %v533_v8 }
 0x238   :  { %v988_v45 = vpop.eup %987  ;;  %762 = vst [vmem:[%s1843_s5] sm:$0xff] %v730_v42  ;;  %v707_v16 = vmul.f32 %v1639_v15, %v668_v57  ;;  %v595_v61 = vadd.f32 1e-05, %v563_v38 }
 0x239   :  { %v990_v27 = vpop.eup %989  ;;  %v733_v9 = vadd.f32 %v1645_v54, %v694_v44  ;;  %v671_v63 = vmul.f32 %v988_v45, %v1500_v39  ;;  %v608_v23 = vadd.f32 1e-05, %v576_v60  ;;  %v539_v3 = vpop.xlane.xlu1 %538 }
 0x23a   :  { %v505_v35 = vpop.xlane.xlu0 %504  ;;  %v746_v2 = vadd.f32 %v1645_v54, %v707_v16  ;;  %v654_v10 = vmul.f32 %v990_v27, %v1505_v40  ;;  %999 = vrsqrt.f32 %v595_v61  ;;  %v579_v33 = vmul.f32 0.0078125, %v539_v3 }
 0x23b   :  { %765 = vst [vmem:[%s1843_s5 + $0x18] sm:$0xff] %v733_v9  ;;  %v710_v49 = vmul.f32 %v1639_v15, %v671_v63  ;;  %1001 = vrsqrt.f32 %v608_v23  ;;  %v562_v59 = vmul.f32 0.0078125, %v505_v35 }
 0x23c   :  { %v992_v52 = vpop.eup %991  ;;  %778 = vst [vmem:[%s1843_s5 + $0x80] sm:$0xff] %v746_v2  ;;  %v693_v39 = vmul.f32 %v1639_v15, %v654_v10  ;;  %v611_v53 = vadd.f32 1e-05, %v579_v33 }
 0x23d   :  { %v994_v1 = vpop.eup %993  ;;  %v749_v40 = vadd.f32 %v1645_v54, %v710_v49  ;;  %v657_v32 = vmul.f32 %v992_v52, %v1515_v62  ;;  %v594_v34 = vadd.f32 1e-05, %v562_v59  ;;  %v511_v19 = vpop.xlane.xlu1 %510 }
 0x23e   :  { %v537_v0 = vpop.xlane.xlu0 %536  ;;  %v732_v30 = vadd.f32 %v1645_v54, %v693_v39  ;;  %v670_v36 = vmul.f32 %v994_v1, %v1508_v20  ;;  %1003 = vrsqrt.f32 %v611_v53  ;;  %v565_v31 = vmul.f32 0.0078125, %v511_v19 }
 0x23f   :  { %781 = vst [vmem:[%s1843_s5 + $0x98] sm:$0xff] %v749_v40  ;;  %v696_v11 = vmul.f32 %v1639_v15, %v657_v32  ;;  %1005 = vrsqrt.f32 %v594_v34  ;;  %v578_v6 = vmul.f32 0.0078125, %v537_v0 }
 0x240   :  { %v996_v28 = vpop.eup %995  ;;  %764 = vst [vmem:[%s1843_s5 + $0x10] sm:$0xff] %v732_v30  ;;  %v709_v62 = vmul.f32 %v1639_v15, %v670_v36  ;;  %v597_v13 = vadd.f32 1e-05, %v565_v31 }
 0x241   :  { %v998_v25 = vpop.eup %997  ;;  %v735_v20 = vadd.f32 %v1645_v54, %v696_v11  ;;  %v673_v8 = vmul.f32 %v996_v28, %v1525_v4  ;;  %v610_v42 = vadd.f32 1e-05, %v578_v6  ;;  %v543_v57 = vpop.xlane.xlu1 %542 }
 0x242   :  { %v509_v38 = vpop.xlane.xlu0 %508  ;;  %v748_v44 = vadd.f32 %v1645_v54, %v709_v62  ;;  %v656_v60 = vmul.f32 %v998_v25, %v1520_v48  ;;  %1007 = vrsqrt.f32 %v597_v13  ;;  %v581_v45 = vmul.f32 0.0078125, %v543_v57 }
 0x243   :  { %767 = vst [vmem:[%s1843_s5 + $0x28] sm:$0xff] %v735_v20  ;;  %v712_v16 = vmul.f32 %v1639_v15, %v673_v8  ;;  %1009 = vrsqrt.f32 %v610_v42  ;;  %v564_v61 = vmul.f32 0.0078125, %v509_v38 }
 0x244   :  { %v1000_v27 = vpop.eup %999  ;;  %780 = vst [vmem:[%s1843_s5 + $0x90] sm:$0xff] %v748_v44  ;;  %v695_v4 = vmul.f32 %v1639_v15, %v656_v60  ;;  %v613_v9 = vadd.f32 1e-05, %v581_v45 }
 0x245   :  { %v1002_v63 = vpop.eup %1001  ;;  %v751_v48 = vadd.f32 %v1645_v54, %v712_v16  ;;  %v659_v23 = vmul.f32 %v1000_v27, %v1535_v17  ;;  %v596_v3 = vadd.f32 1e-05, %v564_v61  ;;  %v515_v35 = vpop.xlane.xlu1 %514 }
 0x246   :  { %v541_v2 = vpop.xlane.xlu0 %540  ;;  %v734_v10 = vadd.f32 %v1645_v54, %v695_v4  ;;  %v672_v33 = vmul.f32 %v1002_v63, %v1528_v58  ;;  %1011 = vrsqrt.f32 %v613_v9  ;;  %v567_v49 = vmul.f32 0.0078125, %v515_v35 }
 0x247   :  { %783 = vst [vmem:[%s1843_s5 + $0xa8] sm:$0xff] %v751_v48  ;;  %v698_v59 = vmul.f32 %v1639_v15, %v659_v23  ;;  %1013 = vrsqrt.f32 %v596_v3  ;;  %v580_v52 = vmul.f32 0.0078125, %v541_v2 }
 0x248   :  { %v1004_v39 = vpop.eup %1003  ;;  %766 = vst [vmem:[%s1843_s5 + $0x20] sm:$0xff] %v734_v10  ;;  %v711_v17 = vmul.f32 %v1639_v15, %v672_v33  ;;  %v599_v53 = vadd.f32 1e-05, %v567_v49 }
 0x249   :  { %v1006_v1 = vpop.eup %1005  ;;  %v737_v58 = vadd.f32 %v1645_v54, %v698_v59  ;;  %v675_v40 = vmul.f32 %v1004_v39, %v1545_v12  ;;  %v612_v32 = vadd.f32 1e-05, %v580_v52  ;;  %v547_v34 = vpop.xlane.xlu1 %546 }
 0x24a   :  { %v513_v19 = vpop.xlane.xlu0 %512  ;;  %v750_v0 = vadd.f32 %v1645_v54, %v711_v17  ;;  %v658_v30 = vmul.f32 %v1006_v1, %v1540_v18  ;;  %1015 = vrsqrt.f32 %v599_v53  ;;  %v583_v36 = vmul.f32 0.0078125, %v547_v34 }
 0x24b   :  { %769 = vst [vmem:[%s1843_s5 + $0x38] sm:$0xff] %v737_v58  ;;  %v714_v31 = vmul.f32 %v1639_v15, %v675_v40  ;;  %1017 = vrsqrt.f32 %v612_v32  ;;  %v566_v11 = vmul.f32 0.0078125, %v513_v19 }
 0x24c   :  { %v1008_v6 = vpop.eup %1007  ;;  %782 = vst [vmem:[%s1843_s5 + $0xa0] sm:$0xff] %v750_v0  ;;  %v697_v12 = vmul.f32 %v1639_v15, %v658_v30  ;;  %v615_v28 = vadd.f32 1e-05, %v583_v36 }
 0x24d   :  { %v1010_v62 = vpop.eup %1009  ;;  %v753_v18 = vadd.f32 %v1645_v54, %v714_v31  ;;  %v661_v13 = vmul.f32 %v1008_v6, %v1555_v41  ;;  %v598_v25 = vadd.f32 1e-05, %v566_v11  ;;  %v519_v20 = vpop.xlane.xlu1 %518 }
 0x24e   :  { %v545_v8 = vpop.xlane.xlu0 %544  ;;  %v736_v42 = vadd.f32 %v1645_v54, %v697_v12  ;;  %v674_v57 = vmul.f32 %v1010_v62, %v1548_v7  ;;  %1019 = vrsqrt.f32 %v615_v28  ;;  %v569_v38 = vmul.f32 0.0078125, %v519_v20 }
 0x24f   :  { %785 = vst [vmem:[%s1843_s5 + $0xb8] sm:$0xff] %v753_v18  ;;  %v700_v44 = vmul.f32 %v1639_v15, %v661_v13  ;;  %1021 = vrsqrt.f32 %v598_v25  ;;  %v582_v60 = vmul.f32 0.0078125, %v545_v8 }
 0x250   :  { %v1012_v45 = vpop.eup %1011  ;;  %768 = vst [vmem:[%s1843_s5 + $0x30] sm:$0xff] %v736_v42  ;;  %v713_v41 = vmul.f32 %v1639_v15, %v674_v57  ;;  %v601_v16 = vadd.f32 1e-05, %v569_v38 }
 0x251   :  { %v1014_v61 = vpop.eup %1013  ;;  %v739_v7 = vadd.f32 %v1645_v54, %v700_v44  ;;  %v677_v27 = vmul.f32 %v1012_v45, %v1565_v26  ;;  %v614_v4 = vadd.f32 1e-05, %v582_v60  ;;  %v551_v9 = vpop.xlane.xlu1 %550 }
 0x252   :  { %v517_v63 = vpop.xlane.xlu0 %516  ;;  %v752_v48 = vadd.f32 %v1645_v54, %v713_v41  ;;  %v660_v23 = vmul.f32 %v1014_v61, %v1560_v46  ;;  %1023 = vrsqrt.f32 %v601_v16  ;;  %v585_v3 = vmul.f32 0.0078125, %v551_v9 }
 0x253   :  { %771 = vst [vmem:[%s1843_s5 + $0x48] sm:$0xff] %v739_v7  ;;  %v716_v35 = vmul.f32 %v1639_v15, %v677_v27  ;;  %1025 = vrsqrt.f32 %v614_v4  ;;  %v568_v2 = vmul.f32 0.0078125, %v517_v63 }
 0x254   :  { %v1016_v10 = vpop.eup %1015  ;;  %784 = vst [vmem:[%s1843_s5 + $0xb0] sm:$0xff] %v752_v48  ;;  %v699_v26 = vmul.f32 %v1639_v15, %v660_v23  ;;  %v617_v33 = vadd.f32 1e-05, %v585_v3 }
 0x255   :  { %v1018_v49 = vpop.eup %1017  ;;  %v755_v46 = vadd.f32 %v1645_v54, %v716_v35  ;;  %v663_v59 = vmul.f32 %v1016_v10, %v1575_v5  ;;  %v600_v52 = vadd.f32 1e-05, %v568_v2  ;;  %v523_v39 = vpop.xlane.xlu1 %522 }
 0x256   :  { %v549_v17 = vpop.xlane.xlu0 %548  ;;  %v738_v53 = vadd.f32 %v1645_v54, %v699_v26  ;;  %v676_v1 = vmul.f32 %v1018_v49, %v1568_v22  ;;  %1027 = vrsqrt.f32 %v617_v33  ;;  %v571_v58 = vmul.f32 0.0078125, %v523_v39 }
 0x257   :  { %787 = vst [vmem:[%s1843_s5 + $0xc8] sm:$0xff] %v755_v46  ;;  %v702_v40 = vmul.f32 %v1639_v15, %v663_v59  ;;  %1029 = vrsqrt.f32 %v600_v52  ;;  %v584_v32 = vmul.f32 0.0078125, %v549_v17 }
 0x258   :  { %v1020_v34 = vpop.eup %1019  ;;  %770 = vst [vmem:[%s1843_s5 + $0x40] sm:$0xff] %v738_v53  ;;  %v715_v5 = vmul.f32 %v1639_v15, %v676_v1  ;;  %v603_v19 = vadd.f32 1e-05, %v571_v58 }
 0x259   :  { %v1022_v0 = vpop.eup %1021  ;;  %v741_v22 = vadd.f32 %v1645_v54, %v702_v40  ;;  %v679_v30 = vmul.f32 %v1020_v34, %v1585_v29  ;;  %v616_v36 = vadd.f32 1e-05, %v584_v32  ;;  %v555_v31 = vpop.xlane.xlu1 %554 }
 0x25a   :  { %v521_v11 = vpop.xlane.xlu0 %520  ;;  %v754_v6 = vadd.f32 %v1645_v54, %v715_v5  ;;  %v662_v12 = vmul.f32 %v1022_v0, %v1580_v55  ;;  %1031 = vrsqrt.f32 %v603_v19  ;;  %v587_v28 = vmul.f32 0.0078125, %v555_v31 }
 0x25b   :  { %773 = vst [vmem:[%s1843_s5 + $0x58] sm:$0xff] %v741_v22  ;;  %v718_v62 = vmul.f32 %v1639_v15, %v679_v30  ;;  %1033 = vrsqrt.f32 %v616_v36  ;;  %v570_v18 = vmul.f32 0.0078125, %v521_v11 }
 0x25c   :  { %v1024_v13 = vpop.eup %1023  ;;  %786 = vst [vmem:[%s1843_s5 + $0xc0] sm:$0xff] %v754_v6  ;;  %v701_v29 = vmul.f32 %v1639_v15, %v662_v12  ;;  %v619_v25 = vadd.f32 1e-05, %v587_v28 }
 0x25d   :  { %v1026_v20 = vpop.eup %1025  ;;  %v757_v55 = vadd.f32 %v1645_v54, %v718_v62  ;;  %v665_v8 = vmul.f32 %v1024_v13, %v1595_v21  ;;  %v602_v42 = vadd.f32 1e-05, %v570_v18 }
 0x25e   :  { %v553_v57 = vpop.xlane.xlu0 %552  ;;  %v740_v38 = vadd.f32 %v1645_v54, %v701_v29  ;;  %v678_v44 = vmul.f32 %v1026_v20, %v1588_v43  ;;  %1035 = vrsqrt.f32 %v619_v25 }
 0x25f   :  { %v586_v60 = vmul.f32 0.0078125, %v553_v57  ;;  %789 = vst [vmem:[%s1843_s5 + $0xd8] sm:$0xff] %v757_v55  ;;  %v704_v45 = vmul.f32 %v1639_v15, %v665_v8  ;;  %1037 = vrsqrt.f32 %v602_v42 }
 0x260   :  { %v1028_v41 = vpop.eup %1027  ;;  %772 = vst [vmem:[%s1843_s5 + $0x50] sm:$0xff] %v740_v38  ;;  %v717_v21 = vmul.f32 %v1639_v15, %v678_v44 }
 0x261   :  { %v618_v16 = vadd.f32 1e-05, %v586_v60  ;;  %v1030_v61 = vpop.eup %1029  ;;  %v743_v43 = vadd.f32 %v1645_v54, %v704_v45  ;;  %v681_v7 = vmul.f32 %v1028_v41, %v1605_v14 }
 0x262   :  { %v756_v27 = vadd.f32 %v1645_v54, %v717_v21  ;;  %v664_v4 = vmul.f32 %v1030_v61, %v1600_v37 }
 0x263   :  { %1039 = vrsqrt.f32 %v618_v16  ;;  %775 = vst [vmem:[%s1843_s5 + $0x68] sm:$0xff] %v743_v43  ;;  %v720_v9 = vmul.f32 %v1639_v15, %v681_v7 }
 0x264   :  { %v1032_v63 = vpop.eup %1031  ;;  %788 = vst [vmem:[%s1843_s5 + $0xd0] sm:$0xff] %v756_v27  ;;  %v703_v48 = vmul.f32 %v1639_v15, %v664_v4 }
 0x265   :  { %v1034_v23 = vpop.eup %1033  ;;  %v759_v14 = vadd.f32 %v1645_v54, %v720_v9  ;;  %v667_v3 = vmul.f32 %v1032_v63, %v1615_v50 }
 0x266   :  { %v742_v37 = vadd.f32 %v1645_v54, %v703_v48  ;;  %v680_v35 = vmul.f32 %v1034_v23, %v1608_v47 }
 0x267   :  { %791 = vst [vmem:[%s1843_s5 + $0xe8] sm:$0xff] %v759_v14  ;;  %v706_v2 = vmul.f32 %v1639_v15, %v667_v3 }
 0x268   :  { %v1036_v10 = vpop.eup %1035  ;;  %774 = vst [vmem:[%s1843_s5 + $0x60] sm:$0xff] %v742_v37  ;;  %v719_v26 = vmul.f32 %v1639_v15, %v680_v35 }
 0x269   :  { %v1038_v33 = vpop.eup %1037  ;;  %v745_v50 = vadd.f32 %v1645_v54, %v706_v2  ;;  %v683_v49 = vmul.f32 %v1036_v10, %v1625_v24 }
 0x26a   :  { %v758_v47 = vadd.f32 %v1645_v54, %v719_v26  ;;  %v666_v46 = vmul.f32 %v1038_v33, %v1620_v56 }
 0x26b   :  { %777 = vst [vmem:[%s1843_s5 + $0x78] sm:$0xff] %v745_v50  ;;  %v722_v59 = vmul.f32 %v1639_v15, %v683_v49 }
 0x26c   :  { %790 = vst [vmem:[%s1843_s5 + $0xe0] sm:$0xff] %v758_v47  ;;  %v705_v39 = vmul.f32 %v1639_v15, %v666_v46 }
 0x26d   :  { %v1040_v52 = vpop.eup %1039  ;;  %v761_v17 = vadd.f32 %v1645_v54, %v722_v59 }
 0x26e   :  { %v682_v24 = vmul.f32 %v1040_v52, %v1628_v51  ;;  %v744_v53 = vadd.f32 %v1645_v54, %v705_v39 }
 0x26f   :  { %793 = vst [vmem:[%s1843_s5 + $0xf8] sm:$0xff] %v761_v17 }
 0x270   :  { %v721_v56 = vmul.f32 %v1639_v15, %v682_v24  ;;  %776 = vst [vmem:[%s1843_s5 + $0x70] sm:$0xff] %v744_v53 }
 0x272   :  { %v760_v1 = vadd.f32 %v1645_v54, %v721_v56 }
 0x274   :  { %792 = vst [vmem:[%s1843_s5 + $0xf0] sm:$0xff] %v760_v1 }

</bundles_post_ra>
